<compile_context>
chip_gen: v7x
topology: tpu7x:2x2x1
jax: 0.10.0
libtpu: 0.0.40
codegen_flags: <defaults>
</compile_context>

<pallas_src>
import functools

import jax
import jax.numpy as jnp
from jax.experimental import pallas as pl
from jax.experimental.pallas import tpu as pltpu


def _round_up(x, m):
    return (x + m - 1) // m * m


def _pick_time_chunk(S, max_chunk=16):
    """Largest sublane-friendly chunk that divides S (block-shape legal)."""
    if S <= max_chunk:
        return S
    best = 0
    for c in range(8, max_chunk + 1, 8):
        if S % c == 0:
            best = c
    if best:
        return best
    # Fall back: whole sequence in one grid step (block == full dim is legal).
    return S


# ---------------------------------------------------------------------------
# Phase 1: sequence-wide input projection   G = X @ Wx + (b_i + b_h)
# ---------------------------------------------------------------------------
def _proj_kernel(x_ref, wx_ref, b_ref, g_ref):
    g_ref[...] = (
        jnp.dot(x_ref[...], wx_ref[...], preferred_element_type=jnp.float32)
        + b_ref[...]
    )


def _input_projection(x_flat, wx, b, *, row_tile=512):
    R, I = x_flat.shape
    H4 = wx.shape[1]
    rt = min(R, row_tile)

    est = (2 * rt * I + 2 * I * H4 + 2 * H4 + 2 * rt * H4) * 4
    vmem_limit = int(min(max(2 * est + (1 << 20), 32 * 2**20), 64 * 2**20))

    return pl.pallas_call(
        _proj_kernel,
        out_shape=jax.ShapeDtypeStruct((R, H4), jnp.float32),
        grid_spec=pltpu.PrefetchScalarGridSpec(
            num_scalar_prefetch=0,
            grid=(pl.cdiv(R, rt),),
            in_specs=[
                pl.BlockSpec((rt, I), lambda r: (r, 0)),       # rows of X
                pl.BlockSpec((I, H4), lambda r: (0, 0)),       # Wx (resident)
                pl.BlockSpec((1, H4), lambda r: (0, 0)),       # fused bias
            ],
            out_specs=pl.BlockSpec((rt, H4), lambda r: (r, 0)),
        ),
        compiler_params=pltpu.CompilerParams(
            dimension_semantics=("parallel",),
            vmem_limit_bytes=vmem_limit,
        ),
    )(x_flat, wx, b)


# ---------------------------------------------------------------------------
# Phase 2: recurrence.  One grid step == one (batch tile, time chunk).
# ---------------------------------------------------------------------------
def _lstm_recurrent_kernel(g_ref, wh_ref, out_ref, hN_ref, cN_ref,
                           h_scr, c_scr, *, hidden_dim, t_chunk):
    ti = pl.program_id(1)

    @pl.when(ti == 0)
    def _():
        h_scr[...] = jnp.zeros_like(h_scr)
        c_scr[...] = jnp.zeros_like(c_scr)

    H = hidden_dim
    h = h_scr[...]                               # (Bt, Hp) f32, lives in vregs
    c = c_scr[...]

    # Statically unrolled chunk: per step only h_prev @ Wh hits the MXU;
    # the x-projection (incl. bias) was precomputed into g_ref.
    for tt in range(t_chunk):
        gates = g_ref[:, tt, :] + jnp.dot(
            h, wh_ref[...], preferred_element_type=jnp.float32)   # (Bt, 4Hp)
        i_g = jax.nn.sigmoid(gates[:, 0 * H:1 * H])
        f_g = jax.nn.sigmoid(gates[:, 1 * H:2 * H])
        g_g = jnp.tanh(gates[:, 2 * H:3 * H])
        o_g = jax.nn.sigmoid(gates[:, 3 * H:4 * H])
        c = f_g * c + i_g * g_g
        h = o_g * jnp.tanh(c)
        out_ref[:, tt, :] = h.astype(out_ref.dtype)

    h_scr[...] = h
    c_scr[...] = c

    # Final state written only once, on the last time chunk of this batch tile.
    @pl.when(ti == pl.num_programs(1) - 1)
    def _():
        hN_ref[...] = h.astype(hN_ref.dtype)
        cN_ref[...] = c.astype(cN_ref.dtype)


def lstm_pallas(x, params, *, max_time_chunk=16):
    """x: (B, S, I).  params: dict of the 16 LSTM parameters.  Returns
    (output (B, S, H), (h_n (B, H), c_n (B, H)))."""
    x = x.astype(jnp.float32)
    B, S, I = x.shape
    H = params["W_ii"].shape[1]

    Bp = _round_up(B, 8)          # sublane-aligned batch
    Hp = _round_up(H, 128)        # lane-aligned hidden (gate slices on tiles)
    Tc = _pick_time_chunk(S, max_time_chunk)
    nt = S // Tc

    # Split the batch across two tiles when large enough (-> 2 TCs on v7x).
    Bt = Bp // 2 if Bp % 16 == 0 else Bp
    nb = Bp // Bt

    pad_c = lambda w: jnp.pad(w, ((0, 0), (0, Hp - H)))
    pad_rc = lambda w: jnp.pad(w, ((0, Hp - H), (0, Hp - H)))
    pad_v = lambda v: jnp.pad(v, (0, Hp - H))

    # Gate order [i, f, g, o]; each gate padded to Hp columns (zero padding is
    # inert: padded lanes stay exactly 0 through the recurrence).
    # TODO(synk): optional bf16 weight storage for v6e/v7x (kept f32 here to
    # preserve exact f32 numerics against the reference).
    wx = jnp.concatenate(
        [pad_c(params["W_ii"]), pad_c(params["W_if"]),
         pad_c(params["W_ig"]), pad_c(params["W_io"])], axis=1
    ).astype(jnp.float32)                                           # (I, 4Hp)
    wh = jnp.concatenate(
        [pad_rc(params["W_hi"]), pad_rc(params["W_hf"]),
         pad_rc(params["W_hg"]), pad_rc(params["W_ho"])], axis=1
    ).astype(jnp.float32)                                           # (Hp, 4Hp)
    b = jnp.concatenate(
        [pad_v(params["b_ii"] + params["b_hi"]),
         pad_v(params["b_if"] + params["b_hf"]),
         pad_v(params["b_ig"] + params["b_hg"]),
         pad_v(params["b_io"] + params["b_ho"])], axis=0
    ).reshape(1, 4 * Hp).astype(jnp.float32)                        # (1, 4Hp)

    # Pad batch only (no-op when already aligned); keep batch-major layout —
    # no time-major transposes anywhere.
    x_p = jnp.pad(x, ((0, Bp - B), (0, 0), (0, 0)))

    # ---- Phase 1: one big matmul over all B*S rows ----
    g = _input_projection(x_p.reshape(Bp * S, I), wx, b).reshape(Bp, S, 4 * Hp)

    # ---- Phase 2: recurrence ----
    kernel = functools.partial(_lstm_recurrent_kernel, hidden_dim=Hp, t_chunk=Tc)

    est = (2 * Bt * Tc * 4 * Hp        # g double-buffer
           + 2 * Bt * Tc * Hp          # out double-buffer
           + 2 * Hp * 4 * Hp           # resident Wh
           + 6 * Bt * Hp) * 4          # hN/cN outs + h/c scratch
    vmem_limit = int(min(max(2 * est + (1 << 20), 32 * 2**20), 64 * 2**20))

    out_p, h_n, c_n = pl.pallas_call(
        kernel,
        out_shape=(
            jax.ShapeDtypeStruct((Bp, S, Hp), x.dtype),   # output sequence
            jax.ShapeDtypeStruct((Bp, Hp), x.dtype),      # final h
            jax.ShapeDtypeStruct((Bp, Hp), x.dtype),      # final c
        ),
        grid_spec=pltpu.PrefetchScalarGridSpec(
            num_scalar_prefetch=0,
            grid=(nb, nt),
            in_specs=[
                pl.BlockSpec((Bt, Tc, 4 * Hp), lambda bi, ti: (bi, ti, 0)),  # G chunk
                pl.BlockSpec((Hp, 4 * Hp), lambda bi, ti: (0, 0)),           # Wh resident
            ],
            out_specs=[
                pl.BlockSpec((Bt, Tc, Hp), lambda bi, ti: (bi, ti, 0)),      # out chunk
                pl.BlockSpec((Bt, Hp), lambda bi, ti: (bi, 0)),              # h_n
                pl.BlockSpec((Bt, Hp), lambda bi, ti: (bi, 0)),              # c_n
            ],
            scratch_shapes=[
                pltpu.VMEM((Bt, Hp), jnp.float32),   # h state across chunks
                pltpu.VMEM((Bt, Hp), jnp.float32),   # c state across chunks
            ],
        ),
        compiler_params=pltpu.CompilerParams(
            dimension_semantics=("parallel", "arbitrary"),   # batch ∥, time seq
            vmem_limit_bytes=vmem_limit,
        ),
    )(g, wh)

    output = out_p[:B, :, :H]
    return output, (h_n[:B, :H], c_n[:B, :H])


# ---------------------------------------------------------------------------
# Pure-JAX reference (matches the PyTorch forward exactly) + init + test.
# ---------------------------------------------------------------------------
def lstm_reference(x, params):
    B, S, I = x.shape
    H = params["W_ii"].shape[1]
    h = jnp.zeros((B, H), jnp.float32)
    c = jnp.zeros((B, H), jnp.float32)

    def step(carry, xt):
        h, c = carry
        i = jax.nn.sigmoid(xt @ params["W_ii"] + params["b_ii"] + h @ params["W_hi"] + params["b_hi"])
        f = jax.nn.sigmoid(xt @ params["W_if"] + params["b_if"] + h @ params["W_hf"] + params["b_hf"])
        g = jnp.tanh(xt @ params["W_ig"] + params["b_ig"] + h @ params["W_hg"] + params["b_hg"])
        o = jax.nn.sigmoid(xt @ params["W_io"] + params["b_io"] + h @ params["W_ho"] + params["b_ho"])
        c = f * c + i * g
        h = o * jnp.tanh(c)
        return (h, c), h

    (h, c), outs = jax.lax.scan(step, (h, c), jnp.transpose(x, (1, 0, 2)))
    return jnp.transpose(outs, (1, 0, 2)), (h, c)


def init_params(key, input_dim, hidden_dim):
    names_shapes = [
        ("W_ii", (input_dim, hidden_dim)), ("W_if", (input_dim, hidden_dim)),
        ("W_ig", (input_dim, hidden_dim)), ("W_io", (input_dim, hidden_dim)),
        ("W_hi", (hidden_dim, hidden_dim)), ("W_hf", (hidden_dim, hidden_dim)),
        ("W_hg", (hidden_dim, hidden_dim)), ("W_ho", (hidden_dim, hidden_dim)),
        ("b_ii", (hidden_dim,)), ("b_if", (hidden_dim,)),
        ("b_ig", (hidden_dim,)), ("b_io", (hidden_dim,)),
        ("b_hi", (hidden_dim,)), ("b_hf", (hidden_dim,)),
        ("b_hg", (hidden_dim,)), ("b_ho", (hidden_dim,)),
    ]
    keys = jax.random.split(key, len(names_shapes))
    return {name: jax.random.uniform(k, shape, jnp.float32, -0.1, 0.1)
            for k, (name, shape) in zip(keys, names_shapes)}


if __name__ == "__main__":
    key = jax.random.PRNGKey(0)
    k_p, k_x = jax.random.split(key)

    batch, seq_len, input_dim, hidden_dim = 2, 8, 16, 32
    params = init_params(k_p, input_dim, hidden_dim)
    x = jax.random.normal(k_x, (batch, seq_len, input_dim), jnp.float32)

    out, (h_n, c_n) = jax.block_until_ready(lstm_pallas(x, params))
    out_ref, (h_ref, c_ref) = lstm_reference(x, params)

    assert out.shape == (batch, seq_len, hidden_dim)
    assert h_n.shape == (batch, hidden_dim) and c_n.shape == (batch, hidden_dim)
    assert jnp.allclose(out, out_ref, atol=1e-5, rtol=1e-5)
    assert jnp.allclose(h_n, h_ref, atol=1e-5, rtol=1e-5)
    assert jnp.allclose(c_n, c_ref, atol=1e-5, rtol=1e-5)

    print("KERNEL_OK")
</pallas_src>

<mosaic_0001>
module attributes {stable_mosaic.version = 11 : i64} {
  func.func @_proj_kernel(%arg0: i32, %arg1: memref<64x16xf32, #tpu.memory_space<vmem>>, %arg2: memref<16x512xf32, #tpu.memory_space<vmem>>, %arg3: memref<1x512xf32, #tpu.memory_space<vmem>>, %arg4: memref<64x512xf32, #tpu.memory_space<vmem>>) attributes {dimension_semantics = [#tpu.dimension_semantics<parallel>], iteration_bounds = array<i64: 1>, scalar_prefetch = 0 : i64, scratch_operands = 0 : i64, tpu.core_type = #tpu.core_type<tc>, window_params = [{transform_indices = @transform_0, window_bounds = array<i64: 64, 16>}, {pipeline_mode = #tpu.pipeline_mode<synchronous>, transform_indices = @transform_1, window_bounds = array<i64: 16, 512>}, {pipeline_mode = #tpu.pipeline_mode<synchronous>, transform_indices = @transform_2, window_bounds = array<i64: 1, 512>}, {transform_indices = @transform_3, window_bounds = array<i64: 64, 512>}]} {
    %c0 = arith.constant 0 : index
    %c0_0 = arith.constant 0 : index
    %0 = vector.load %arg1[%c0, %c0_0] : memref<64x16xf32, #tpu.memory_space<vmem>>, vector<64x16xf32>
    %c0_1 = arith.constant 0 : index
    %c0_2 = arith.constant 0 : index
    %1 = vector.load %arg2[%c0_1, %c0_2] : memref<16x512xf32, #tpu.memory_space<vmem>>, vector<16x512xf32>
    %cst = arith.constant dense<0.000000e+00> : vector<64x512xf32>
    %2 = tpu.matmul %0, %1, %cst {dimension_numbers = #tpu.dot_dimension_numbers<[1], [0], [0], [1], [0, 0, 1, 1], [], []>} : vector<64x16xf32>, vector<16x512xf32>, vector<64x512xf32> -> vector<64x512xf32>
    %c0_3 = arith.constant 0 : index
    %c0_4 = arith.constant 0 : index
    %3 = vector.load %arg3[%c0_3, %c0_4] : memref<1x512xf32, #tpu.memory_space<vmem>>, vector<1x512xf32>
    %4 = vector.broadcast %3 : vector<1x512xf32> to vector<64x512xf32>
    %5 = arith.addf %2, %4 : vector<64x512xf32>
    %c0_5 = arith.constant 0 : index
    %c0_6 = arith.constant 0 : index
    %6 = vector.load %arg4[%c0_5, %c0_6] : memref<64x512xf32, #tpu.memory_space<vmem>>, vector<64x512xf32>
    tpu.vector_store %arg4[%c0_5, %c0_6], %5 {strides = array<i32>} : memref<64x512xf32, #tpu.memory_space<vmem>>, vector<64x512xf32>,
    return
  }
  func.func @transform_0(%arg0: i32) -> (i32, i32) {
    %c0_i32 = arith.constant 0 : i32
    %c0_i32_0 = arith.constant 0 : i32
    return %arg0, %c0_i32 : i32, i32
  }
  func.func @transform_1(%arg0: i32) -> (i32, i32) {
    %c0_i32 = arith.constant 0 : i32
    %c0_i32_0 = arith.constant 0 : i32
    %c0_i32_1 = arith.constant 0 : i32
    return %c0_i32, %c0_i32_0 : i32, i32
  }
  func.func @transform_2(%arg0: i32) -> (i32, i32) {
    %c0_i32 = arith.constant 0 : i32
    %c0_i32_0 = arith.constant 0 : i32
    %c0_i32_1 = arith.constant 0 : i32
    return %c0_i32, %c0_i32_0 : i32, i32
  }
  func.func @transform_3(%arg0: i32) -> (i32, i32) {
    %c0_i32 = arith.constant 0 : i32
    %c0_i32_0 = arith.constant 0 : i32
    return %arg0, %c0_i32 : i32, i32
  }
}

</mosaic_0001>

<bundles_post_ra>
// kernel: tpu_custom_call.1
= control target key start
LH: loop header
LB: loop body
LE: loop exit
PB: predicated region body
PF: predicated region fallthrough
CT: control target
= control target key end

     0   :  { %v404_v7 = vmov 0.0   ;;  %vm53_vm0 = vcmask 130048   ;;  %s547_s0 = inlined_call_operand.vmem [shape: f32[64,16], index: 0, kind: input, shape index: {}]   ;;  %s548_s1 = inlined_call_operand.vmem [shape: f32[16,512], index: 1, kind: input, shape index: {}]   ;;  %s549_s2 = inlined_call_operand.vmem [shape: f32[1,512], index: 2, kind: input, shape index: {}]   ;;  %s550_s3 = inlined_call_operand.hbm [shape: f32[64,512], index: 3, kind: output, shape index: {}]  }
   0x1   :  { %v24_v0 = vld [vmem:[%s548_s1 + $0x8] sm:$0xff]  ;;  %v26_v2 = vld [vmem:[%s548_s1 + $0x18] sm:$0xff]  ;;  %v23_v5 = vld [vmem:[%s548_s1] sm:$0xff]  ;;  %142 = vmatprep.mubr.f32.mxu0 %v404_v7  ;;  %255 = vmatprep.mubr.f32.mxu1 %v404_v7 }
   0x2   :  { %v28_v1 = vld [vmem:[%s548_s1 + $0x28] sm:$0xff]  ;;  %v30_v4 = vld [vmem:[%s548_s1 + $0x38] sm:$0xff]  ;;  %v27_v6 = vld [vmem:[%s548_s1 + $0x20] sm:$0xff] }
   0x3   :  { %v368_v3 = vpack.c.bf16 %v28_v1, %v24_v0  ;;  %v372_v8 = vpack.c.bf16 %v30_v4, %v26_v2  ;;  %v370_v9 = vpack.c.bf16 %v27_v6, %v23_v5  ;;  %v25_v10 = vld [vmem:[%s548_s1 + $0x10] sm:$0xff]  ;;  %v15_v13 = vld [vmem:[%s547_s0] sm:$0xff] }
   0x4   :  { %v29_v11 = vld [vmem:[%s548_s1 + $0x30] sm:$0xff] }
   0x5   :  { %369 = vmatprep.subr.bf16.mxu0 %v368_v3  ;;  %v374_v12 = vpack.c.bf16 %v29_v11, %v25_v10  ;;  %373 = vmatprep.subr.bf16.mxu1 %v372_v8 }
   0x6   :  { %371 = vmatpush1.bf16.msra.mxu0 %v370_v9 }
   0x7   :  { %375 = vmatpush1.bf16.msra.mxu1 %v374_v12 }
   0x8   :  { %8 = vsyncpa [#allocation3], 0  ;;  %v16_v14 = vld [vmem:[%s547_s0 + $0x8] sm:$0xff]  ;;  %v17_v15 = vld [vmem:[%s547_s0 + $0x10] sm:$0xff]  ;;  %v33_v21 = vlaneseq }
   0x9   :  { %352 = vmatmul.mubr.msk.f32.vlgmr.msra.gmra.mrb[0].mxu0 %vm53_vm0, %v15_v13  ;;  %v18_v16 = vld [vmem:[%s547_s0 + $0x18] sm:$0xff]  ;;  %v19_v17 = vld [vmem:[%s547_s0 + $0x20] sm:$0xff]  ;;  %v20_v18 = vld [vmem:[%s547_s0 + $0x28] sm:$0xff] }
   0xa   :  { %360 = vmatmul.mubr.msk.f32.vlgmr.msra.gmra.mrb[0].mxu1 %vm53_vm0, %v15_v13  ;;  %148 = vmatprep.mubr.f32.mxu0 %v404_v7  ;;  %v21_v19 = vld [vmem:[%s547_s0 + $0x30] sm:$0xff]  ;;  %v22_v20 = vld [vmem:[%s547_s0 + $0x38] sm:$0xff]  ;;  %v34_v22 = vshrl.u32 %v33_v21, 7  ;;  %v31_v24 = vld [vmem:[%s549_s2] sm:$0xf]  ;;  %s405_s0 = smov [#allocation2]  }
   0xb   :  { %261 = vmatprep.mubr.f32.mxu1 %v404_v7  ;;  %s341_s2 = sshll.u32 %s405_s0, 4  ;;  %s342_s2 = int_to_ptr.vmem [resolvable:$true] %s341_s2 }
   0xc   :  { %v35_v23 = vsub.s32 0, %v34_v22  ;;  %v43_v25 = vsub.s32 2, %v34_v22  ;;  %v39_v26 = vsub.s32 1, %v34_v22  ;;  %v47_v27 = vsub.s32 3, %v34_v22  ;;  %s380_s18 = scalar_lea.vmem %s342_s2, 4096  ;;  %p385_p1 = scmp.lt.s32.totalorder %s342_s2, %s342_s2 }
   0xd   :  { %353 = vmatmul.mubr.msk.f32.gmra.mrb[2].mxu0 %vm53_vm0, %v16_v14  ;;  %p381_p0 = scmp.ne.s32.totalorder %s342_s2, %s380_s18  ;;  %p386_p2 = scmp.lt.s32.totalorder %s380_s18, %s380_s18 }
   0xe   :  { %361 = vmatmul.mubr.msk.f32.gmra.mrb[2].mxu1 %vm53_vm0, %v16_v14  ;;  %154 = vmatprep.mubr.f32.mxu0 %v404_v7  ;;  %v495_v28 = vrot.slane %v31_v24, %v35_v23  ;;  %v497_v29 = vrot.slane %v31_v24, %v43_v25  ;;  %v499_v30 = vrot.slane %v31_v24, %v39_v26 }
   0xf   :  { %267 = vmatprep.mubr.f32.mxu1 %v404_v7  ;;  %v501_v31 = vrot.slane %v31_v24, %v47_v27  ;;  %p387_p3 = por %p386_p2, %p385_p1 }
  0x11   :  { %354 = vmatmul.mubr.msk.f32.gmra.mrb[4].mxu0 %vm53_vm0, %v17_v15  ;;  %p388_p4 = pnand %p387_p3, %p381_p0 }
  0x12   :  { %362 = vmatmul.mubr.msk.f32.gmra.mrb[4].mxu1 %vm53_vm0, %v17_v15  ;;  %160 = vmatprep.mubr.f32.mxu0 %v404_v7 }
  0x13   :  { %273 = vmatprep.mubr.f32.mxu1 %v404_v7 }
  0x15   :  { %355 = vmatmul.mubr.msk.f32.gmra.mrb[6].mxu0 %vm53_vm0, %v18_v16 }
  0x16   :  { %363 = vmatmul.mubr.msk.f32.gmra.mrb[6].mxu1 %vm53_vm0, %v18_v16  ;;  %166 = vmatprep.mubr.f32.mxu0 %v404_v7 }
  0x17   :  { %279 = vmatprep.mubr.f32.mxu1 %v404_v7 }
  0x19   :  { %356 = vmatmul.mubr.msk.f32.gmra.mrb[8].mxu0 %vm53_vm0, %v19_v17 }
  0x1a   :  { %364 = vmatmul.mubr.msk.f32.gmra.mrb[8].mxu1 %vm53_vm0, %v19_v17  ;;  %172 = vmatprep.mubr.f32.mxu0 %v404_v7 }
  0x1b   :  { %285 = vmatprep.mubr.f32.mxu1 %v404_v7 }
  0x1d   :  { %357 = vmatmul.mubr.msk.f32.gmra.mrb[10].mxu0 %vm53_vm0, %v20_v18 }
  0x1e   :  { %365 = vmatmul.mubr.msk.f32.gmra.mrb[10].mxu1 %vm53_vm0, %v20_v18  ;;  %178 = vmatprep.mubr.f32.mxu0 %v404_v7 }
  0x1f   :  { %291 = vmatprep.mubr.f32.mxu1 %v404_v7 }
  0x21   :  { %358 = vmatmul.mubr.msk.f32.gmra.mrb[12].mxu0 %vm53_vm0, %v21_v19 }
  0x22   :  { %366 = vmatmul.mubr.msk.f32.gmra.mrb[12].mxu1 %vm53_vm0, %v21_v19  ;;  %184 = vmatprep.mubr.f32.mxu0 %v404_v7 }
  0x23   :  { %297 = vmatprep.mubr.f32.mxu1 %v404_v7 }
  0x25   :  { %359 = vmatmul.mubr.msk.f32.gmra.mrb[14].mxu0 %vm53_vm0, %v22_v20 }
  0x26   :  { %367 = vmatmul.mubr.msk.f32.gmra.mrb[14].mxu1 %vm53_vm0, %v22_v20 }
  0xdc   :  { %v144_v32 = vpop.f32.mrb[0].mxu0 }
  0xdd   :  { %v145_v33 = vadd.f32 %v144_v32, %v495_v28  ;;  %v257_v34 = vpop.f32.mrb[0].mxu1  ;;  %v146_v35 = vpop.f32.mrb[1].mxu0 }
  0xde   :  { %v258_v36 = vadd.f32 %v257_v34, %v497_v29  ;;  %v147_v37 = vadd.f32 %v146_v35, %v499_v30  ;;  %v259_v38 = vpop.f32.mrb[1].mxu1 }
  0xdf   :  { %304 = vst [vmem:[#allocation2] sm:$0xff] %v145_v33  ;;  %v260_v39 = vadd.f32 %v259_v38, %v501_v31 }
  0xe0   :  { %306 = vst [vmem:[#allocation2 + $0x10] sm:$0xff] %v258_v36  ;;  %305 = vst [vmem:[#allocation2 + $0x8] sm:$0xff] %v147_v37  ;;  %v150_v40 = vpop.f32.mrb[2].mxu0 }
  0xe1   :  { %307 = vst [vmem:[#allocation2 + $0x18] sm:$0xff] %v260_v39  ;;  %v151_v41 = vadd.f32 %v150_v40, %v495_v28  ;;  %v263_v42 = vpop.f32.mrb[2].mxu1  ;;  %v152_v43 = vpop.f32.mrb[3].mxu0 }
  0xe2   :  { %v264_v44 = vadd.f32 %v263_v42, %v497_v29  ;;  %v153_v45 = vadd.f32 %v152_v43, %v499_v30  ;;  %v265_v46 = vpop.f32.mrb[3].mxu1 }
  0xe3   :  { %308 = vst [vmem:[#allocation2 + $0x20] sm:$0xff] %v151_v41  ;;  %v266_v47 = vadd.f32 %v265_v46, %v501_v31 }
  0xe4   :  { %310 = vst [vmem:[#allocation2 + $0x30] sm:$0xff] %v264_v44  ;;  %309 = vst [vmem:[#allocation2 + $0x28] sm:$0xff] %v153_v45  ;;  %v156_v48 = vpop.f32.mrb[4].mxu0 }
  0xe5   :  { %311 = vst [vmem:[#allocation2 + $0x38] sm:$0xff] %v266_v47  ;;  %v157_v49 = vadd.f32 %v156_v48, %v495_v28  ;;  %v269_v50 = vpop.f32.mrb[4].mxu1  ;;  %v158_v51 = vpop.f32.mrb[5].mxu0 }
  0xe6   :  { %v270_v52 = vadd.f32 %v269_v50, %v497_v29  ;;  %v159_v53 = vadd.f32 %v158_v51, %v499_v30  ;;  %v271_v54 = vpop.f32.mrb[5].mxu1 }
  0xe7   :  { %312 = vst [vmem:[#allocation2 + $0x40] sm:$0xff] %v157_v49  ;;  %v272_v55 = vadd.f32 %v271_v54, %v501_v31 }
  0xe8   :  { %314 = vst [vmem:[#allocation2 + $0x50] sm:$0xff] %v270_v52  ;;  %313 = vst [vmem:[#allocation2 + $0x48] sm:$0xff] %v159_v53  ;;  %v162_v56 = vpop.f32.mrb[6].mxu0 }
  0xe9   :  { %315 = vst [vmem:[#allocation2 + $0x58] sm:$0xff] %v272_v55  ;;  %v163_v57 = vadd.f32 %v162_v56, %v495_v28  ;;  %v275_v58 = vpop.f32.mrb[6].mxu1  ;;  %v164_v59 = vpop.f32.mrb[7].mxu0 }
  0xea   :  { %v276_v60 = vadd.f32 %v275_v58, %v497_v29  ;;  %v165_v61 = vadd.f32 %v164_v59, %v499_v30  ;;  %v277_v62 = vpop.f32.mrb[7].mxu1 }
  0xeb   :  { %316 = vst [vmem:[#allocation2 + $0x60] sm:$0xff] %v163_v57  ;;  %v278_v63 = vadd.f32 %v277_v62, %v501_v31 }
  0xec   :  { %318 = vst [vmem:[#allocation2 + $0x70] sm:$0xff] %v276_v60  ;;  %317 = vst [vmem:[#allocation2 + $0x68] sm:$0xff] %v165_v61  ;;  %v168_v0 = vpop.f32.mrb[8].mxu0 }
  0xed   :  { %319 = vst [vmem:[#allocation2 + $0x78] sm:$0xff] %v278_v63  ;;  %v169_v1 = vadd.f32 %v168_v0, %v495_v28  ;;  %v281_v2 = vpop.f32.mrb[8].mxu1  ;;  %v170_v3 = vpop.f32.mrb[9].mxu0 }
  0xee   :  { %v282_v4 = vadd.f32 %v281_v2, %v497_v29  ;;  %v171_v5 = vadd.f32 %v170_v3, %v499_v30  ;;  %v283_v6 = vpop.f32.mrb[9].mxu1 }
  0xef   :  { %320 = vst [vmem:[#allocation2 + $0x80] sm:$0xff] %v169_v1  ;;  %v284_v7 = vadd.f32 %v283_v6, %v501_v31 }
  0xf0   :  { %322 = vst [vmem:[#allocation2 + $0x90] sm:$0xff] %v282_v4  ;;  %321 = vst [vmem:[#allocation2 + $0x88] sm:$0xff] %v171_v5  ;;  %v174_v8 = vpop.f32.mrb[10].mxu0 }
  0xf1   :  { %323 = vst [vmem:[#allocation2 + $0x98] sm:$0xff] %v284_v7  ;;  %v175_v9 = vadd.f32 %v174_v8, %v495_v28  ;;  %v287_v10 = vpop.f32.mrb[10].mxu1  ;;  %v176_v11 = vpop.f32.mrb[11].mxu0 }
  0xf2   :  { %v288_v12 = vadd.f32 %v287_v10, %v497_v29  ;;  %v177_v13 = vadd.f32 %v176_v11, %v499_v30  ;;  %v289_v14 = vpop.f32.mrb[11].mxu1 }
  0xf3   :  { %324 = vst [vmem:[#allocation2 + $0xa0] sm:$0xff] %v175_v9  ;;  %v290_v15 = vadd.f32 %v289_v14, %v501_v31 }
  0xf4   :  { %326 = vst [vmem:[#allocation2 + $0xb0] sm:$0xff] %v288_v12  ;;  %325 = vst [vmem:[#allocation2 + $0xa8] sm:$0xff] %v177_v13  ;;  %v180_v16 = vpop.f32.mrb[12].mxu0 }
  0xf5   :  { %327 = vst [vmem:[#allocation2 + $0xb8] sm:$0xff] %v290_v15  ;;  %v181_v17 = vadd.f32 %v180_v16, %v495_v28  ;;  %v293_v18 = vpop.f32.mrb[12].mxu1  ;;  %v182_v19 = vpop.f32.mrb[13].mxu0 }
  0xf6   :  { %v294_v20 = vadd.f32 %v293_v18, %v497_v29  ;;  %v183_v21 = vadd.f32 %v182_v19, %v499_v30  ;;  %v295_v22 = vpop.f32.mrb[13].mxu1 }
  0xf7   :  { %328 = vst [vmem:[#allocation2 + $0xc0] sm:$0xff] %v181_v17  ;;  %v296_v23 = vadd.f32 %v295_v22, %v501_v31 }
  0xf8   :  { %330 = vst [vmem:[#allocation2 + $0xd0] sm:$0xff] %v294_v20  ;;  %329 = vst [vmem:[#allocation2 + $0xc8] sm:$0xff] %v183_v21  ;;  %v186_v24 = vpop.f32.mrb[14].mxu0 }
  0xf9   :  { %331 = vst [vmem:[#allocation2 + $0xd8] sm:$0xff] %v296_v23  ;;  %v187_v25 = vadd.f32 %v186_v24, %v495_v28  ;;  %v299_v26 = vpop.f32.mrb[14].mxu1  ;;  %v188_v27 = vpop.f32.mrb[15].mxu0 }
  0xfa   :  { %v300_v32 = vadd.f32 %v299_v26, %v497_v29  ;;  %v189_v33 = vadd.f32 %v188_v27, %v499_v30  ;;  %v301_v34 = vpop.f32.mrb[15].mxu1 }
  0xfb   :  { %332 = vst [vmem:[#allocation2 + $0xe0] sm:$0xff] %v187_v25  ;;  %v302_v35 = vadd.f32 %v301_v34, %v501_v31 }
  0xfc   :  { %334 = vst [vmem:[#allocation2 + $0xf0] sm:$0xff] %v300_v32  ;;  %333 = vst [vmem:[#allocation2 + $0xe8] sm:$0xff] %v189_v33 }
  0xfd   :  { %335 = vst [vmem:[#allocation2 + $0xf8] sm:$0xff] %v302_v35 }
  0xfe   :  { %391 = shalt.err (!%p388_p4)
}
  0xff   :  { %s392_s21 = scalar_lea.hbm %s550_s3, 4096 }
 0x100   :  { %p393_p5 = scmp.ne.s32.totalorder %s550_s3, %s392_s21  ;;  %p396_p6 = scmp.lt.u32.totalorder %s392_s21, %s550_s3 }
 0x102   :  { %p398_p7 = pnand %p396_p6, %p393_p5 }
 0x104   :  { %401 = shalt.err (!%p398_p7)
}
 0x105   :  { %s406_s26 = smov 512   ;;  %s407_s27 = smov 32  }
 0x106   :  { %347 = dma.vmem_to_hbm [thread:$0]  %s342_s2, 4096, %s550_s3, [#allocation3], %s406_s26, %s406_s26, %s407_s27  }
 0x107   :  { %402 = dma.done.wait [#allocation3], 4096  }
 0x108   :  { %403 = vsyncadd [#allocation3], 4294963200 }
 0x109   :  { %351 = vsyncpa [#allocation3], 1 }

</bundles_post_ra>
